<compile_context>
chip_gen: v7x
topology: tpu7x:2x2x1
jax: 0.10.0
libtpu: 0.0.40
codegen_flags: <defaults>
</compile_context>

<pallas_src>
import jax
import jax.numpy as jnp
from jax.experimental import pallas as pl
from jax.experimental.pallas import tpu as pltpu

LN_EPS = 1e-7
GELU_C = 0.7978845608028654  # sqrt(2/pi)


def _mlp_kernel(x_ref, g_ref, bln_ref, w1_ref, b1_ref, w2_ref, b2_ref,
                o_ref, xn_ref, acc_ref):
    k = pl.program_id(1)

    @pl.when(k == 0)
    def _():
        # Pre-LN over the full hidden dim, f32 statistics (biased variance,
        # matching torch.nn.LayerNorm).  Cached for all F tiles of this row
        # block, so the reduction is done once per M tile.
        x = x_ref[...].astype(jnp.float32)
        mean = jnp.mean(x, axis=-1, keepdims=True)
        cent = x - mean
        var = jnp.mean(cent * cent, axis=-1, keepdims=True)
        xn = cent * jax.lax.rsqrt(var + LN_EPS)
        xn = xn * g_ref[...].astype(jnp.float32) + bln_ref[...].astype(jnp.float32)
        xn_ref[...] = xn.astype(xn_ref.dtype)
        acc_ref[...] = jnp.zeros_like(acc_ref)

    # c_fc column chunk: (TM, H) @ (H, TF) + b1[k], f32 accumulation on the MXU.
    h = jnp.dot(xn_ref[...], w1_ref[...], preferred_element_type=jnp.float32)
    h = h + b1_ref[...].astype(jnp.float32)

    # gelu_new (tanh approximation used by GPT-Neo), elementwise in f32.
    h = 0.5 * h * (1.0 + jnp.tanh(GELU_C * (h + 0.044715 * h * h * h)))

    # c_proj partial: (TM, TF) @ (TF, H), accumulated across F tiles in f32.
    acc_ref[...] += jnp.dot(h.astype(w2_ref.dtype), w2_ref[...],
                            preferred_element_type=jnp.float32)

    @pl.when(k == pl.num_programs(1) - 1)
    def _():
        y = acc_ref[...] + b2_ref[...].astype(jnp.float32)
        # resid_dropout is identity at inference; add the pre-LN residual.
        o_ref[...] = (y + x_ref[...].astype(jnp.float32)).astype(o_ref.dtype)


def _round_up(x, m):
    return -(-x // m) * m


def _pick_tiles(M, H, F, x_dtype, w_dtype):
    """VMEM-aware tile table (v7x has 64 MiB/TC, v5e/v6e 128 MiB)."""
    try:
        vmem_cap = int(pltpu.get_tpu_info().vmem_capacity_bytes)
    except Exception:  # non-TPU backend / older jax: assume the smallest budget
        vmem_cap = 64 << 20
    budget = int(vmem_cap * 0.70)

    xb = jnp.dtype(x_dtype).itemsize
    wb = jnp.dtype(w_dtype).itemsize

    m_ceil = _round_up(M, 8)
    tm_cands = [t for t in (512, 256, 128, 64, 32, 16, 8) if t <= m_ceil] or [m_ceil]
    tf_cands = [t for t in (4096, 3072, 2048, 1536, 1024, 768, 512, 384, 256, 128)
                if t <= F and F % t == 0] or [F]

    def vmem_usage(tm, tf):
        x_tile = 2 * tm * H * xb           # streamed input (double buffered)
        out_tile = 2 * tm * H * xb         # streamed output
        xn_s = tm * H * wb                 # cached LN activations scratch
        acc_s = tm * H * 4                 # f32 accumulator scratch
        w1_tile = 2 * H * tf * wb          # streamed c_fc column block
        w2_tile = 2 * tf * H * wb          # streamed c_proj row block
        b1_tile = 2 * tf * wb
        gelu_tmp = tm * tf * 4             # f32 intermediate
        small = 4 * H * wb + 4 * H * xb    # ln_g, ln_b, b2 (tiny)
        return (x_tile + out_tile + xn_s + acc_s + w1_tile + w2_tile
                + b1_tile + gelu_tmp + small)

    for tm in tm_cands:               # prefer large row tiles,
        for tf in tf_cands:           # then the largest F tile that fits.
            if vmem_usage(tm, tf) <= budget:
                return tm, tf, vmem_cap
    return tm_cands[-1], tf_cands[-1], vmem_cap


def anygpt_mlp_only(x, ln_g, ln_b, w1, b1, w2, b2, *, tile_m=None, tile_f=None):
    """x: (B, S, H). w1: (H, F), b1: (F,), w2: (F, H), b2: (H,), ln_g/ln_b: (H,)."""
    B, S, H = x.shape
    F = w1.shape[1]
    M = B * S

    auto_tm, auto_tf, vmem_cap = _pick_tiles(M, H, F, x.dtype, w1.dtype)
    tile_m = auto_tm if tile_m is None else tile_m
    tile_f = auto_tf if tile_f is None else tile_f
    assert tile_m % 8 == 0, "tile_m must be a multiple of 8 (sublane)"
    assert F % tile_f == 0, "tile_f must divide the intermediate size"

    x2 = x.reshape(M, H)
    # Pad rows so tile_m divides M; padded rows are sliced off afterwards.
    M_pad = _round_up(M, tile_m)
    if M_pad != M:
        x2 = jnp.pad(x2, ((0, M_pad - M), (0, 0)))

    # Keep 1-row params as (1, N) so block shape == full array shape on TPU.
    ln_g2 = ln_g.reshape(1, H)
    ln_b2 = ln_b.reshape(1, H)
    b1_2 = b1.reshape(1, F)
    b2_2 = b2.reshape(1, H)

    grid = (M_pad // tile_m, F // tile_f)

    flops = 4 * M_pad * H * F  # two matmuls (2*M*H*F each)
    bytes_accessed = (2 * M_pad * H * x.dtype.itemsize
                      + 2 * H * F * w1.dtype.itemsize
                      + (F + 3 * H) * w1.dtype.itemsize)

    out = pl.pallas_call(
        _mlp_kernel,
        out_shape=jax.ShapeDtypeStruct((M_pad, H), x.dtype),
        grid_spec=pltpu.PrefetchScalarGridSpec(
            num_scalar_prefetch=0,
            grid=grid,
            in_specs=[
                pl.BlockSpec((tile_m, H), lambda i, k: (i, 0)),   # x tile (resident over k)
                pl.BlockSpec((1, H), lambda i, k: (0, 0)),        # ln gamma
                pl.BlockSpec((1, H), lambda i, k: (0, 0)),        # ln beta
                pl.BlockSpec((H, tile_f), lambda i, k: (0, k)),   # w1 column block
                pl.BlockSpec((1, tile_f), lambda i, k: (0, k)),   # b1 chunk
                pl.BlockSpec((tile_f, H), lambda i, k: (k, 0)),   # w2 row block
                pl.BlockSpec((1, H), lambda i, k: (0, 0)),        # b2
            ],
            out_specs=pl.BlockSpec((tile_m, H), lambda i, k: (i, 0)),
            scratch_shapes=[
                pltpu.VMEM((tile_m, H), w1.dtype),      # cached LN output (matmul dtype)
                pltpu.VMEM((tile_m, H), jnp.float32),   # c_proj f32 accumulator
            ],
        ),
        compiler_params=pltpu.CompilerParams(
            dimension_semantics=("parallel", "arbitrary"),
            vmem_limit_bytes=int(min(vmem_cap * 0.9, 128 * 1024 * 1024)),
        ),
        cost_estimate=pl.CostEstimate(
            flops=flops,
            transcendentals=M_pad * F,
            bytes_accessed=bytes_accessed,
        ),
    )(x2, ln_g2, ln_b2, w1, b1_2, w2, b2_2)

    out = out[:M].reshape(B, S, H)
    return (out,)


def _reference(x, ln_g, ln_b, w1, b1, w2, b2):
    xf = x.astype(jnp.float32)
    mean = jnp.mean(xf, axis=-1, keepdims=True)
    var = jnp.mean((xf - mean) ** 2, axis=-1, keepdims=True)
    xn = (xf - mean) / jnp.sqrt(var + LN_EPS) * ln_g + ln_b
    h = xn @ w1 + b1
    h = 0.5 * h * (1.0 + jnp.tanh(GELU_C * (h + 0.044715 * h ** 3)))
    y = h @ w2 + b2
    return y + xf


if __name__ == "__main__":
    # Small shapes consistent with the module: (batch, seq, hidden), F = 4*hidden.
    # S = 9 makes M = 18, exercising the row-padding path.
    B, S, H = 2, 9, 128
    F = 4 * H

    key = jax.random.PRNGKey(0)
    kx, k1, k2, k3, k4, k5, k6 = jax.random.split(key, 7)

    x = jax.random.normal(kx, (B, S, H), dtype=jnp.float32)
    w1 = 0.02 * jax.random.normal(k1, (H, F), dtype=jnp.float32)
    b1 = 0.02 * jax.random.normal(k2, (F,), dtype=jnp.float32)
    w2 = 0.02 * jax.random.normal(k3, (F, H), dtype=jnp.float32)
    b2 = 0.02 * jax.random.normal(k4, (H,), dtype=jnp.float32)
    ln_g = 1.0 + 0.1 * jax.random.normal(k5, (H,), dtype=jnp.float32)
    ln_b = 0.1 * jax.random.normal(k6, (H,), dtype=jnp.float32)

    y_ref = _reference(x, ln_g, ln_b, w1, b1, w2, b2)

    # 1) Auto-picked (VMEM-aware) tiles.
    (y_auto,) = anygpt_mlp_only(x, ln_g, ln_b, w1, b1, w2, b2)
    y_auto = jax.block_until_ready(y_auto)
    assert y_auto.shape == (B, S, H)
    assert jnp.allclose(y_auto, y_ref, atol=1e-4, rtol=1e-4), "mismatch (auto tiles)"

    # 2) Small explicit tiles to exercise M tiling, F-axis accumulation and
    #    row padding (grid = (3, 4) at these shapes).
    (y_tiled,) = anygpt_mlp_only(x, ln_g, ln_b, w1, b1, w2, b2,
                                 tile_m=8, tile_f=128)
    y_tiled = jax.block_until_ready(y_tiled)
    assert jnp.allclose(y_tiled, y_ref, atol=1e-4, rtol=1e-4), "mismatch (explicit tiles)"

    print("KERNEL_OK")
</pallas_src>

<mosaic_0001>
module attributes {stable_mosaic.version = 11 : i64} {
  func.func @_mlp_kernel(%arg0: i32, %arg1: i32, %arg2: memref<16x128xf32, #tpu.memory_space<vmem>>, %arg3: memref<1x128xf32, #tpu.memory_space<vmem>>, %arg4: memref<1x128xf32, #tpu.memory_space<vmem>>, %arg5: memref<128x512xf32, #tpu.memory_space<vmem>>, %arg6: memref<1x512xf32, #tpu.memory_space<vmem>>, %arg7: memref<512x128xf32, #tpu.memory_space<vmem>>, %arg8: memref<1x128xf32, #tpu.memory_space<vmem>>, %arg9: memref<16x128xf32, #tpu.memory_space<vmem>>, %arg10: memref<16x128xf32, #tpu.memory_space<vmem>>, %arg11: memref<16x128xf32, #tpu.memory_space<vmem>>) attributes {dimension_semantics = [#tpu.dimension_semantics<parallel>, #tpu.dimension_semantics<arbitrary>], iteration_bounds = array<i64: 2, 1>, scalar_prefetch = 0 : i64, scratch_operands = 2 : i64, tpu.core_type = #tpu.core_type<tc>, window_params = [{transform_indices = @transform_0, window_bounds = array<i64: 16, 128>}, {pipeline_mode = #tpu.pipeline_mode<synchronous>, transform_indices = @transform_1, window_bounds = array<i64: 1, 128>}, {pipeline_mode = #tpu.pipeline_mode<synchronous>, transform_indices = @transform_2, window_bounds = array<i64: 1, 128>}, {transform_indices = @transform_3, window_bounds = array<i64: 128, 512>}, {transform_indices = @transform_4, window_bounds = array<i64: 1, 512>}, {transform_indices = @transform_5, window_bounds = array<i64: 512, 128>}, {pipeline_mode = #tpu.pipeline_mode<synchronous>, transform_indices = @transform_6, window_bounds = array<i64: 1, 128>}, {transform_indices = @transform_7, window_bounds = array<i64: 16, 128>}]} {
    %c0_i32 = arith.constant 0 : i32
    %0 = arith.cmpi eq, %arg1, %c0_i32 : i32
    %1 = arith.extui %0 : i1 to i32
    %c0_i32_0 = arith.constant 0 : i32
    %2 = arith.cmpi ne, %1, %c0_i32_0 : i32
    scf.if %2 {
      %c0_19 = arith.constant 0 : index
      %c0_20 = arith.constant 0 : index
      %30 = vector.load %arg2[%c0_19, %c0_20] : memref<16x128xf32, #tpu.memory_space<vmem>>, vector<16x128xf32>
      %cst_21 = arith.constant dense<0.000000e+00> : vector<16xf32>
      %31 = vector.multi_reduction <add>, %30, %cst_21 [1] : vector<16x128xf32> to vector<16xf32>
      %32 = vector.shape_cast %31 : vector<16xf32> to vector<16x1xf32>
      %cst_22 = arith.constant 1.280000e+02 : f32
      %33 = vector.broadcast %cst_22 : f32 to vector<16x1xf32>
      %34 = arith.divf %32, %33 : vector<16x1xf32>
      %35 = vector.broadcast %34 : vector<16x1xf32> to vector<16x128xf32>
      %36 = arith.subf %30, %35 : vector<16x128xf32>
      %37 = arith.mulf %36, %36 : vector<16x128xf32>
      %cst_23 = arith.constant dense<0.000000e+00> : vector<16xf32>
      %38 = vector.multi_reduction <add>, %37, %cst_23 [1] : vector<16x128xf32> to vector<16xf32>
      %39 = vector.shape_cast %38 : vector<16xf32> to vector<16x1xf32>
      %cst_24 = arith.constant 1.280000e+02 : f32
      %40 = vector.broadcast %cst_24 : f32 to vector<16x1xf32>
      %41 = arith.divf %39, %40 : vector<16x1xf32>
      %cst_25 = arith.constant 1.000000e-07 : f32
      %42 = vector.broadcast %cst_25 : f32 to vector<16x1xf32>
      %43 = arith.addf %41, %42 : vector<16x1xf32>
      %44 = math.rsqrt %43 : vector<16x1xf32>
      %45 = vector.broadcast %44 : vector<16x1xf32> to vector<16x128xf32>
      %46 = arith.mulf %36, %45 : vector<16x128xf32>
      %c0_26 = arith.constant 0 : index
      %c0_27 = arith.constant 0 : index
      %47 = vector.load %arg3[%c0_26, %c0_27] : memref<1x128xf32, #tpu.memory_space<vmem>>, vector<1x128xf32>
      %48 = vector.broadcast %47 : vector<1x128xf32> to vector<16x128xf32>
      %49 = arith.mulf %46, %48 : vector<16x128xf32>
      %c0_28 = arith.constant 0 : index
      %c0_29 = arith.constant 0 : index
      %50 = vector.load %arg4[%c0_28, %c0_29] : memref<1x128xf32, #tpu.memory_space<vmem>>, vector<1x128xf32>
      %51 = vector.broadcast %50 : vector<1x128xf32> to vector<16x128xf32>
      %52 = arith.addf %49, %51 : vector<16x128xf32>
      %c0_30 = arith.constant 0 : index
      %c0_31 = arith.constant 0 : index
      %53 = vector.load %arg10[%c0_30, %c0_31] : memref<16x128xf32, #tpu.memory_space<vmem>>, vector<16x128xf32>
      tpu.vector_store %arg10[%c0_30, %c0_31], %52 {strides = array<i32>} : memref<16x128xf32, #tpu.memory_space<vmem>>, vector<16x128xf32>,
      %cst_32 = arith.constant 0.000000e+00 : f32
      %54 = vector.broadcast %cst_32 : f32 to vector<16x128xf32>
      %c0_33 = arith.constant 0 : index
      %c0_34 = arith.constant 0 : index
      %55 = vector.load %arg11[%c0_33, %c0_34] : memref<16x128xf32, #tpu.memory_space<vmem>>, vector<16x128xf32>
      tpu.vector_store %arg11[%c0_33, %c0_34], %54 {strides = array<i32>} : memref<16x128xf32, #tpu.memory_space<vmem>>, vector<16x128xf32>,
    } else {
    }
    %c0 = arith.constant 0 : index
    %c0_1 = arith.constant 0 : index
    %3 = vector.load %arg10[%c0, %c0_1] : memref<16x128xf32, #tpu.memory_space<vmem>>, vector<16x128xf32>
    %c0_2 = arith.constant 0 : index
    %c0_3 = arith.constant 0 : index
    %4 = vector.load %arg5[%c0_2, %c0_3] : memref<128x512xf32, #tpu.memory_space<vmem>>, vector<128x512xf32>
    %cst = arith.constant dense<0.000000e+00> : vector<16x512xf32>
    %5 = tpu.matmul %3, %4, %cst {dimension_numbers = #tpu.dot_dimension_numbers<[1], [0], [0], [1], [0, 0, 1, 1], [], []>} : vector<16x128xf32>, vector<128x512xf32>, vector<16x512xf32> -> vector<16x512xf32>
    %c0_4 = arith.constant 0 : index
    %c0_5 = arith.constant 0 : index
    %6 = vector.load %arg6[%c0_4, %c0_5] : memref<1x512xf32, #tpu.memory_space<vmem>>, vector<1x512xf32>
    %7 = vector.broadcast %6 : vector<1x512xf32> to vector<16x512xf32>
    %8 = arith.addf %5, %7 : vector<16x512xf32>
    %cst_6 = arith.constant 5.000000e-01 : f32
    %9 = vector.broadcast %cst_6 : f32 to vector<16x512xf32>
    %10 = arith.mulf %9, %8 : vector<16x512xf32>
    %cst_7 = arith.constant 4.471500e-02 : f32
    %11 = vector.broadcast %cst_7 : f32 to vector<16x512xf32>
    %12 = arith.mulf %11, %8 : vector<16x512xf32>
    %13 = arith.mulf %12, %8 : vector<16x512xf32>
    %14 = arith.mulf %13, %8 : vector<16x512xf32>
    %15 = arith.addf %8, %14 : vector<16x512xf32>
    %cst_8 = arith.constant 0.797884583 : f32
    %16 = vector.broadcast %cst_8 : f32 to vector<16x512xf32>
    %17 = arith.mulf %16, %15 : vector<16x512xf32>
    %18 = math.tanh %17 : vector<16x512xf32>
    %cst_9 = arith.constant 1.000000e+00 : f32
    %19 = vector.broadcast %cst_9 : f32 to vector<16x512xf32>
    %20 = arith.addf %19, %18 : vector<16x512xf32>
    %21 = arith.mulf %10, %20 : vector<16x512xf32>
    %c0_10 = arith.constant 0 : index
    %c0_11 = arith.constant 0 : index
    %22 = vector.load %arg11[%c0_10, %c0_11] : memref<16x128xf32, #tpu.memory_space<vmem>>, vector<16x128xf32>
    %c0_12 = arith.constant 0 : index
    %c0_13 = arith.constant 0 : index
    %23 = vector.load %arg7[%c0_12, %c0_13] : memref<512x128xf32, #tpu.memory_space<vmem>>, vector<512x128xf32>
    %cst_14 = arith.constant dense<0.000000e+00> : vector<16x128xf32>
    %24 = tpu.matmul %21, %23, %cst_14 {dimension_numbers = #tpu.dot_dimension_numbers<[1], [0], [0], [1], [0, 0, 1, 1], [], []>} : vector<16x512xf32>, vector<512x128xf32>, vector<16x128xf32> -> vector<16x128xf32>
    %25 = arith.addf %22, %24 : vector<16x128xf32>
    %c0_15 = arith.constant 0 : index
    %c0_16 = arith.constant 0 : index
    %26 = vector.load %arg11[%c0_15, %c0_16] : memref<16x128xf32, #tpu.memory_space<vmem>>, vector<16x128xf32>
    tpu.vector_store %arg11[%c0_15, %c0_16], %25 {strides = array<i32>} : memref<16x128xf32, #tpu.memory_space<vmem>>, vector<16x128xf32>,
    %c0_i32_17 = arith.constant 0 : i32
    %27 = arith.cmpi eq, %arg1, %c0_i32_17 : i32
    %28 = arith.extui %27 : i1 to i32
    %c0_i32_18 = arith.constant 0 : i32
    %29 = arith.cmpi ne, %28, %c0_i32_18 : i32
    scf.if %29 {
      %c0_19 = arith.constant 0 : index
      %c0_20 = arith.constant 0 : index
      %30 = vector.load %arg11[%c0_19, %c0_20] : memref<16x128xf32, #tpu.memory_space<vmem>>, vector<16x128xf32>
      %c0_21 = arith.constant 0 : index
      %c0_22 = arith.constant 0 : index
      %31 = vector.load %arg8[%c0_21, %c0_22] : memref<1x128xf32, #tpu.memory_space<vmem>>, vector<1x128xf32>
      %32 = vector.broadcast %31 : vector<1x128xf32> to vector<16x128xf32>
      %33 = arith.addf %30, %32 : vector<16x128xf32>
      %c0_23 = arith.constant 0 : index
      %c0_24 = arith.constant 0 : index
      %34 = vector.load %arg2[%c0_23, %c0_24] : memref<16x128xf32, #tpu.memory_space<vmem>>, vector<16x128xf32>
      %35 = arith.addf %33, %34 : vector<16x128xf32>
      %c0_25 = arith.constant 0 : index
      %c0_26 = arith.constant 0 : index
      %36 = vector.load %arg9[%c0_25, %c0_26] : memref<16x128xf32, #tpu.memory_space<vmem>>, vector<16x128xf32>
      tpu.vector_store %arg9[%c0_25, %c0_26], %35 {strides = array<i32>} : memref<16x128xf32, #tpu.memory_space<vmem>>, vector<16x128xf32>,
    } else {
    }
    return
  }
  func.func @transform_0(%arg0: i32, %arg1: i32) -> (i32, i32) {
    %c0_i32 = arith.constant 0 : i32
    %c0_i32_0 = arith.constant 0 : i32
    return %arg0, %c0_i32 : i32, i32
  }
  func.func @transform_1(%arg0: i32, %arg1: i32) -> (i32, i32) {
    %c0_i32 = arith.constant 0 : i32
    %c0_i32_0 = arith.constant 0 : i32
    %c0_i32_1 = arith.constant 0 : i32
    return %c0_i32, %c0_i32_0 : i32, i32
  }
  func.func @transform_2(%arg0: i32, %arg1: i32) -> (i32, i32) {
    %c0_i32 = arith.constant 0 : i32
    %c0_i32_0 = arith.constant 0 : i32
    %c0_i32_1 = arith.constant 0 : i32
    return %c0_i32, %c0_i32_0 : i32, i32
  }
  func.func @transform_3(%arg0: i32, %arg1: i32) -> (i32, i32) {
    %c0_i32 = arith.constant 0 : i32
    %c0_i32_0 = arith.constant 0 : i32
    return %c0_i32, %arg1 : i32, i32
  }
  func.func @transform_4(%arg0: i32, %arg1: i32) -> (i32, i32) {
    %c0_i32 = arith.constant 0 : i32
    %c0_i32_0 = arith.constant 0 : i32
    return %c0_i32, %arg1 : i32, i32
  }
  func.func @transform_5(%arg0: i32, %arg1: i32) -> (i32, i32) {
    %c0_i32 = arith.constant 0 : i32
    %c0_i32_0 = arith.constant 0 : i32
    return %arg1, %c0_i32 : i32, i32
  }
  func.func @transform_6(%arg0: i32, %arg1: i32) -> (i32, i32) {
    %c0_i32 = arith.constant 0 : i32
    %c0_i32_0 = arith.constant 0 : i32
    %c0_i32_1 = arith.constant 0 : i32
    return %c0_i32, %c0_i32_0 : i32, i32
  }
  func.func @transform_7(%arg0: i32, %arg1: i32) -> (i32, i32) {
    %c0_i32 = arith.constant 0 : i32
    %c0_i32_0 = arith.constant 0 : i32
    return %arg0, %c0_i32 : i32, i32
  }
}

</mosaic_0001>

<bundles_post_ra>
// kernel: tpu_custom_call.1
= control target key start
LH: loop header
LB: loop body
LE: loop exit
PB: predicated region body
PF: predicated region fallthrough
CT: control target
= control target key end

     0   :  { %12 = vsyncpa [#allocation5], 0  ;;  %s2012_s0 = inlined_call_operand.hbm [shape: f32[32,128], index: 0, kind: input, shape index: {}]   ;;  %s2013_s1 = inlined_call_operand.vmem [shape: f32[1,128], index: 1, kind: input, shape index: {}]   ;;  %s2014_s2 = inlined_call_operand.vmem [shape: f32[1,128], index: 2, kind: input, shape index: {}]   ;;  %s2015_s3 = inlined_call_operand.hbm [shape: f32[128,512], index: 3, kind: input, shape index: {}]   ;;  %s2016_s4 = inlined_call_operand.vmem [shape: f32[1,512], index: 4, kind: input, shape index: {}]   ;;  %s2017_s5 = inlined_call_operand.hbm [shape: f32[512,128], index: 5, kind: input, shape index: {}]   ;;  %s2018_s6 = inlined_call_operand.vmem [shape: f32[1,128], index: 6, kind: input, shape index: {}]   ;;  %s2019_s7 = inlined_call_operand.hbm [shape: f32[32,128], index: 7, kind: output, shape index: {}]  }
   0x1   :  { %14 = vsyncpa [#allocation5 + $0x1], 0 }
   0x2   :  { %15 = vsyncpa [#allocation8], 0 }
   0x3   :  { %16 = vsyncpa [#allocation6], 0 }
   0x4   :  { %18 = vsyncpa [#allocation6 + $0x1], 0  ;;  %s1676_s24 = smov 0   ;;  %s1678_s25 = smov 0  }
   0x5   :  { %s1680_s26 = smov 0   ;;  %s1682_s27 = smov 0  }
   0x6   :  { %s1684_s28 = smov 0   ;;  %s1686_s29 = smov 0  }
   0x7 LB: > { %2027 = sst [smem:[#allocation14_spill]] %s1603_s24  ;;  %s1112_s30 = sadd.s32 4294967295, %s1623_s29   ;;  %s1623_s29 = sphi %s1686_s29, %s24_s29   ;;  %s1619_s28 = sphi %s1684_s28, %s2049_s28   ;;  %s1615_s27 = sphi %s1682_s27, %s2048_s27   ;;  %s1611_s26 = sphi %s1680_s26, %s2047_s26   ;;  %s1607_s25 = sphi %s1678_s25, %s2046_s25   ;;  %s1603_s24 = sphi %s1676_s24, %s2045_s24  }
   0x8   : > { %s1113_s8 = sadd.s32 4294967294, %s1623_s29   ;;  %p56_p0 = scmp.ne.s32.totalorder %s1607_s25, %s1603_s24 }
   0x9   : > { %p1710_p1 = scmp.eq.s32.totalorder %s1112_s30, 0  ;;  %p1714_p2 = scmp.eq.s32.totalorder %s1112_s30, 1 }
   0xa   : > { %p227_p3 = scmp.eq.s32.totalorder %s1113_s8, 1  ;;  %p1114_p5 = scmp.ge.s32.totalorder %s1623_s29, 1 }
   0xb   : > { %s2028_s9 = scalar_select %p1710_p1, 1, 0 }
   0xc   : > { %p1720_p4 = por %p1710_p1, %p56_p0  ;;  %p1725_p6 = por %p227_p3, %p56_p0 }
   0xd   : > { %p234_p7 = scmp.lt.s32.totalorder %s1623_s29, 3  ;;  %s1625_s14 = smov [#allocation7]  }
   0xe   : > { %s2030_s11 = scalar_select %p1720_p4, 1, 0 }
   0xf   : > { %s2031_s12 = scalar_select %p1725_p6, 1, 0 }
  0x10   : > { %p1730_p8 = pnand %p1114_p5, %p234_p7  ;;  %s255_s15 = sshll.u32 %s1625_s14, 4  ;;  %s1734_s15 = int_to_ptr.vmem [resolvable:$true] %s255_s15 }
  0x11   : > { %2032 = sst [smem:[#allocation15_spill]] %s2031_s12  ;;  %s1626_s17 = smov [#allocation9]  }
  0x12   : > { %p1353_p9 = pneg %p1730_p8  ;;  %s279_s18 = sshll.u32 %s1626_s17, 4  ;;  %s1745_s18 = int_to_ptr.vmem [resolvable:$true] %s279_s18 }
  0x13   : > { %s1451_s21 = scalar_lea.hbm %s2015_s3, 8192 }
  0x14   : > { %p1741_p11 = pnand %p1353_p9, %p1710_p1  ;;  %p1452_p12 = scmp.ne.s32.totalorder %s2015_s3, %s1451_s21 }
  0x15   : > { %p1458_p5 = scmp.lt.u32.totalorder %s1451_s21, %s2015_s3 }
  0x16   : > { %p1453_p13 = pneg %p1741_p11 }
  0x18   : > { %p1454_p0 = pnand %p1453_p13, %p1452_p12 }
  0x1a   : > { %p1455_p3 = pneg %p1454_p0 }
  0x1c   : > { %p1460_p7 = pnand %p1458_p5, %p1455_p3 }
  0x1e   : > { %1463 = shalt.err (!%p1460_p7)
}
  0x1f   : > { %s1464_s14 = scalar_lea.vmem %s1734_s15, 8192  ;;  %p1472_p1 = scmp.lt.s32.totalorder %s1734_s15, %s1734_s15 }
  0x20   : > { %p1465_p9 = scmp.ne.s32.totalorder %s1734_s15, %s1464_s14  ;;  %p1473_p12 = scmp.lt.s32.totalorder %s1464_s14, %s1464_s14 }
  0x22   : > { %p1467_p10 = pnand %p1465_p9, %p1453_p13  ;;  %p1474_p0 = por %p1473_p12, %p1472_p1 }
  0x24   : > { %p1468_p6 = pneg %p1467_p10 }
  0x26   : > { %p1475_p4 = pnand %p1474_p0, %p1468_p6 }
  0x28   : > { %1478 = shalt.err (!%p1475_p4)
}
  0x29   : > { %s1627_s17 = smov 512   ;;  %s1628_s19 = smov 32  }
  0x2a   : > { %1356 = dma.hbm_to_vmem [thread:$0]  (!%p1741_p11), %s2015_s3, 8192, %s1734_s15, [#allocation8], %s1627_s17, %s1627_s17, %s1628_s19  }
  0x2b   : > { %s1479_s30 = scalar_lea.hbm %s2017_s5, 8192 }
  0x2c   : > { %p1480_p1 = scmp.ne.s32.totalorder %s2017_s5, %s1479_s30  ;;  %p1486_p10 = scmp.lt.u32.totalorder %s1479_s30, %s2017_s5 }
  0x2e   : > { %p1482_p4 = pnand %p1480_p1, %p1453_p13 }
  0x30   : > { %p1483_p6 = pneg %p1482_p4 }
  0x32   : > { %p1488_p3 = pnand %p1486_p10, %p1483_p6 }
  0x34   : > { %1491 = shalt.err (!%p1488_p3)
}
  0x35   : > { %s1492_s15 = scalar_lea.vmem %s1745_s18, 8192  ;;  %p1500_p12 = scmp.lt.s32.totalorder %s1745_s18, %s1745_s18 }
  0x36   : > { %p1493_p5 = scmp.ne.s32.totalorder %s1745_s18, %s1492_s15  ;;  %p1501_p0 = scmp.lt.s32.totalorder %s1492_s15, %s1492_s15 }
  0x38   : > { %p1495_p7 = pnand %p1493_p5, %p1453_p13  ;;  %p1502_p1 = por %p1501_p0, %p1500_p12 }
  0x3a   : > { %p1496_p9 = pneg %p1495_p7 }
  0x3c   : > { %p1503_p4 = pnand %p1502_p1, %p1496_p9 }
  0x3e   : > { %1506 = shalt.err (!%p1503_p4)
}
  0x3f   : > { %s2025_s24 = smov 128   ;;  %s1630_s12 = smov 8  }
  0x40   : > { %1359 = dma.hbm_to_vmem [thread:$0]  (!%p1741_p11), %s2017_s5, 8192, %s1745_s18, [#allocation8], %s2025_s24, %s2025_s24, %s1630_s12  }
  0x41   : > { %s36_s20 = sadd.s32 1, %s1619_s28  ;;  %s43_s21 = sadd.s32 1, %s1611_s26 }
  0x42   : > { %p38_p13 = scmp.ge.s32.totalorder %s36_s20, 2  ;;  %p50_p6 = scmp.ne.s32.totalorder %s1611_s26, %s1607_s25 }
  0x43   : > { %p51_p10 = scmp.eq.s32.totalorder %s1623_s29, 0  ;;  %p1370_p3 = scmp.lt.s32.totalorder %s1623_s29, 2 }
  0x44   : > { %s2051_s20 = smov (%p38_p13, %s36_s20), 0  ;;  %p1812_p7 = por %p1714_p2, %p50_p6 }
  0x45   : > { %p52_p5 = por %p51_p10, %p50_p6  ;;  %s40_s22 = ssub.s32 %s1619_s28, %s2051_s20 }
  0x46   : > { %s2035_s16 = scalar_select %p1812_p7, 1, 0 }
  0x47   : > { %s296_s23 = sand.u32 1, %s1611_s26   ;;  %p41_p9 = scmp.eq.s32.totalorder %s40_s22, 0 }
  0x48   : > { %s1119_s18 = sshll.u32 %s296_s23, 4  ;;  %s1135_s30 = sshll.u32 %s1619_s28, 8 }
  0x49   : > { %s1821_s8 = scalar_select %p41_p9, %s1611_s26, %s43_s21  }
  0x4a   : > { %s1826_s17 = scalar_lea.hbm %s2012_s0, %s1135_s30  ;;  %s300_s10 = scalar_lea.vmem [#allocation4], %s1119_s18 }
  0x4b   : > { %s307_s19 = sshll.u32 %s300_s10, 4  ;;  %p1830_p2 = pnand %p1370_p3, %p52_p5  ;;  %s1834_s19 = int_to_ptr.vmem [resolvable:$true] %s307_s19 }
  0x4c   : > { %s1836_s21 = scalar_lea.sflag [#allocation5], %s296_s23  ;;  %s1507_s22 = scalar_lea.hbm %s1826_s17, 256 }
  0x4d   : > { %p1508_p11 = scmp.ne.s32.totalorder %s1826_s17, %s1507_s22  ;;  %p1509_p12 = pneg %p1830_p2 }
  0x4e   : > { %s1512_s14 = scalar_lea.hbm %s2012_s0, 512  ;;  %p1513_p4 = scmp.lt.u32.totalorder %s1826_s17, %s2012_s0 }
  0x4f   : > { %p1510_p0 = pnand %p1509_p12, %p1508_p11  ;;  %p1514_p13 = scmp.lt.u32.totalorder %s1512_s14, %s1507_s22 }
  0x50   : > { %p1516_p10 = scmp.lt.u32.totalorder %s1507_s22, %s1826_s17 }
  0x51   : > { %p1511_p1 = pneg %p1510_p0  ;;  %p1515_p6 = por %p1514_p13, %p1513_p4 }
  0x53   : > { %p1517_p3 = por %p1516_p10, %p1515_p6 }
  0x55   : > { %p1518_p5 = pnand %p1517_p3, %p1511_p1 }
  0x57   : > { %1521 = shalt.err (!%p1518_p5)
}
  0x58   : > { %s1522_s23 = scalar_lea.vmem %s1834_s19, 256  ;;  %s1631_s18 = smov [#allocation4]  }
  0x59   : > { %p1523_p9 = scmp.ne.s32.totalorder %s1834_s19, %s1522_s23  ;;  %s1527_s30 = sshll.u32 %s1631_s18, 4  ;;  %s1528_s30 = int_to_ptr.vmem [resolvable:$false] %s1527_s30 }
  0x5a   : > { %s1529_s15 = scalar_lea.vmem %s1528_s30, 512  ;;  %p1530_p7 = scmp.lt.s32.totalorder %s1834_s19, %s1528_s30 }
  0x5b   : > { %p1525_p11 = pnand %p1523_p9, %p1509_p12  ;;  %p1531_p4 = scmp.lt.s32.totalorder %s1529_s15, %s1522_s23 }
  0x5d   : > { %p1526_p0 = pneg %p1525_p11  ;;  %p1532_p13 = por %p1531_p4, %p1530_p7 }
  0x5f   : > { %p1533_p6 = pnand %p1532_p13, %p1526_p0 }
  0x61   : > { %1536 = shalt.err (!%p1533_p6)
}
  0x62   : > { %s2037_s22 = smov 128   ;;  %319 = sbr.rel (%p1730_p8) target bundleno = 904 (0x388), region = 48 }
  0x63   : > { %1363 = dma.hbm_to_vmem [thread:$0]  (!%p1830_p2), %s1826_s17, 256, %s1834_s19, %s1836_s21, %s2037_s22, %s2037_s22, %s1630_s12  }
  0x64   : > { %s1870_s14 = sand.u32 (!%p1730_p8), 1, %s1607_s25   ;;  %p2038_p7 = scmp.ne.s32.totalorder (!%p1730_p8), %s2030_s11, 0 }
  0x65   : > { %s1123_s10 = sshll.u32 (!%p1730_p8), %s1870_s14, 4  ;;  %s322_s23 = scalar_lea.sflag (!%p1730_p8), [#allocation5], %s1870_s14 }
  0x66   : > { %s325_s24 = scalar_lea.vmem (!%p1730_p8), [#allocation4], %s1123_s10 }
  0x69   : > { %1590 = dma.done.wait (%p2038_p7), %s322_s23, 256  }
  0x6a   : > { %1592 = vsyncadd (%p2038_p7), %s322_s23, 4294967040  ;;  %p2039_p2 = scmp.ne.s32.totalorder %s2028_s9, 0 }
  0x6c   : > { %1594 = dma.done.wait (%p2039_p2), [#allocation8], 16384  }
  0x6d   : > { %1596 = vsyncadd (%p2039_p2), [#allocation8], 4294950912  ;;  %v1884_v0 = vld [vmem:[%s325_s24] sm:$0xff]  ;;  %v1887_v1 = vld [vmem:[%s325_s24 + $0x8] sm:$0xff]  ;;  %s367_s30 = scalar_lea.vmem [#allocation10], %s1123_s10  ;;  %s1136_s22 = sshll.u32 %s1615_s27, 8 }
  0x6e   : > { %383 = vadd.xlane.f32.xlu0 %v1884_v0  ;;  %v431_v2 = vld [vmem:[#allocation7 + $0x8] sm:$0xff]  ;;  %v433_v4 = vld [vmem:[#allocation7 + $0x18] sm:$0xff]  ;;  %v430_v7 = vld [vmem:[#allocation7] sm:$0xff]  ;;  %s996_s15 = sshll.u32 %s367_s30, 4  ;;  %s1960_s9 = scalar_lea.hbm %s2019_s7, %s1136_s22  ;;  %s1962_s15 = int_to_ptr.vmem [resolvable:$true] %s996_s15 }
  0x6f   : > { %v435_v3 = vld [vmem:[#allocation7 + $0x28] sm:$0xff]  ;;  %v437_v6 = vld [vmem:[#allocation7 + $0x38] sm:$0xff]  ;;  %v434_v8 = vld [vmem:[#allocation7 + $0x20] sm:$0xff]  ;;  %s983_s11 = scalar_lea.sflag [#allocation6], %s1870_s14  ;;  %s1537_s10 = scalar_lea.vmem %s1962_s15, 256 }
  0x70   : > { %v1213_v5 = vpack.c.bf16 %v435_v3, %v431_v2  ;;  %v1245_v9 = vpack.c.bf16 %v437_v6, %v433_v4  ;;  %v1215_v10 = vpack.c.bf16 %v434_v8, %v430_v7  ;;  %v432_v11 = vld [vmem:[#allocation7 + $0x10] sm:$0xff]  ;;  %v439_v13 = vld [vmem:[#allocation7 + $0x48] sm:$0xff]  ;;  %v441_v16 = vld [vmem:[#allocation7 + $0x58] sm:$0xff]  ;;  %p1538_p8 = scmp.ne.s32.totalorder %s1962_s15, %s1537_s10  ;;  %p2040_p12 = scmp.ne.s32.totalorder %s2035_s16, 0 }
  0x71   : > { %v436_v12 = vld [vmem:[#allocation7 + $0x30] sm:$0xff]  ;;  %v443_v15 = vld [vmem:[#allocation7 + $0x68] sm:$0xff]  ;;  %v445_v17 = vld [vmem:[#allocation7 + $0x78] sm:$0xff]  ;;  %s1633_s27 = smov [#allocation10]  }
  0x72   : > { %385 = vadd.xlane.f32.xlu0 %v1887_v1  ;;  %1214 = vmatprep.subr.bf16.mxu0 %v1213_v5  ;;  %v1247_v14 = vpack.c.bf16 %v436_v12, %v432_v11  ;;  %v1217_v18 = vpack.c.bf16 %v443_v15, %v439_v13  ;;  %v1249_v19 = vpack.c.bf16 %v445_v17, %v441_v16  ;;  %v438_v20 = vld [vmem:[#allocation7 + $0x40] sm:$0xff]  ;;  %v440_v22 = vld [vmem:[#allocation7 + $0x50] sm:$0xff]  ;;  %v447_v25 = vld [vmem:[#allocation7 + $0x88] sm:$0xff]  ;;  %p1539_p1 = pnand %p1538_p8, %p2040_p12  ;;  %s1541_s13 = sshll.u32 %s1633_s27, 4  ;;  %s1542_s13 = int_to_ptr.vmem [resolvable:$false] %s1541_s13 }
  0x73   : > { %1246 = vmatprep.subr.bf16.mxu1 %v1245_v9  ;;  %1216 = vmatpush1.bf16.msra.mxu0 %v1215_v10  ;;  %v442_v21 = vld [vmem:[#allocation7 + $0x60] sm:$0xff]  ;;  %v444_v24 = vld [vmem:[#allocation7 + $0x70] sm:$0xff]  ;;  %v451_v26 = vld [vmem:[#allocation7 + $0xa8] sm:$0xff]  ;;  %s1543_s12 = scalar_lea.vmem %s1542_s13, 512  ;;  %p1544_p3 = scmp.lt.s32.totalorder %s1962_s15, %s1542_s13 }
  0x74   : > { %1248 = vmatpush1.bf16.msra.mxu1 %v1247_v14  ;;  %v1219_v23 = vpack.c.bf16 %v442_v21, %v438_v20  ;;  %1218 = vmatprep.subr.bf16.mxu0 %v1217_v18  ;;  %v1251_v27 = vpack.c.bf16 %v444_v24, %v440_v22  ;;  %v1221_v28 = vpack.c.bf16 %v451_v26, %v447_v25  ;;  %v449_v29 = vld [vmem:[#allocation7 + $0x98] sm:$0xff]  ;;  %v446_v31 = vld [vmem:[#allocation7 + $0x80] sm:$0xff]  ;;  %v448_v34 = vld [vmem:[#allocation7 + $0x90] sm:$0xff]  ;;  %v1632_v24 = vmov 0.0   ;;  %p1540_p10 = pneg %p1539_p1  ;;  %p1545_p5 = scmp.lt.s32.totalorder %s1543_s12, %s1537_s10 }
  0x75   : > { %1250 = vmatprep.subr.bf16.mxu1 %v1249_v19  ;;  %v453_v30 = vld [vmem:[#allocation7 + $0xb8] sm:$0xff]  ;;  %v450_v33 = vld [vmem:[#allocation7 + $0xa0] sm:$0xff]  ;;  %v452_v35 = vld [vmem:[#allocation7 + $0xb0] sm:$0xff]  ;;  %580 = vmatprep.mubr.f32.mxu0 %v1632_v24 }
  0x76   : > { %v1253_v32 = vpack.c.bf16 %v453_v30, %v449_v29  ;;  %v1223_v36 = vpack.c.bf16 %v450_v33, %v446_v31  ;;  %v1255_v37 = vpack.c.bf16 %v452_v35, %v448_v34  ;;  %v455_v46 = vld [vmem:[#allocation7 + $0xc8] sm:$0xff]  ;;  %v457_v48 = vld [vmem:[#allocation7 + $0xd8] sm:$0xff]  ;;  %v454_v51 = vld [vmem:[#allocation7 + $0xc0] sm:$0xff]  ;;  %657 = vmatprep.mubr.f32.mxu1 %v1632_v24  ;;  %p1546_p9 = por %p1545_p5, %p1544_p3 }
  0x77   : > { %1220 = vmatpush1.bf16.msra.mxu0 %v1219_v23  ;;  %v459_v47 = vld [vmem:[#allocation7 + $0xe8] sm:$0xff]  ;;  %v461_v50 = vld [vmem:[#allocation7 + $0xf8] sm:$0xff]  ;;  %v458_v52 = vld [vmem:[#allocation7 + $0xe0] sm:$0xff] }
  0x78   : > { %1252 = vmatpush1.bf16.msra.mxu1 %v1251_v27  ;;  %1222 = vmatprep.subr.bf16.mxu0 %v1221_v28  ;;  %v1225_v49 = vpack.c.bf16 %v459_v47, %v455_v46  ;;  %v1257_v53 = vpack.c.bf16 %v461_v50, %v457_v48  ;;  %v1227_v54 = vpack.c.bf16 %v458_v52, %v454_v51  ;;  %v456_v55 = vld [vmem:[#allocation7 + $0xd0] sm:$0xff]  ;;  %v463_v58 = vld [vmem:[#allocation7 + $0x108] sm:$0xff]  ;;  %v465_v60 = vld [vmem:[#allocation7 + $0x118] sm:$0xff]  ;;  %p1547_p11 = pnand %p1546_p9, %p1540_p10 }
  0x79   : > { %1254 = vmatprep.subr.bf16.mxu1 %v1253_v32  ;;  %v460_v56 = vld [vmem:[#allocation7 + $0xf0] sm:$0xff]  ;;  %v467_v59 = vld [vmem:[#allocation7 + $0x128] sm:$0xff]  ;;  %v469_v62 = vld [vmem:[#allocation7 + $0x138] sm:$0xff] }
  0x7a   : > { %v1259_v57 = vpack.c.bf16 %v460_v56, %v456_v55  ;;  %v1229_v61 = vpack.c.bf16 %v467_v59, %v463_v58  ;;  %v462_v63 = vld [vmem:[#allocation7 + $0x100] sm:$0xff]  ;;  %v1261_v3 = vpack.c.bf16 %v469_v62, %v465_v60  ;;  %v464_v5 = vld [vmem:[#allocation7 + $0x110] sm:$0xff]  ;;  %v471_v8 = vld [vmem:[#allocation7 + $0x148] sm:$0xff] }
  0x7b   : > { %1224 = vmatpush1.bf16.msra.mxu0 %v1223_v36  ;;  %v466_v2 = vld [vmem:[#allocation7 + $0x120] sm:$0xff]  ;;  %v468_v6 = vld [vmem:[#allocation7 + $0x130] sm:$0xff]  ;;  %v475_v9 = vld [vmem:[#allocation7 + $0x168] sm:$0xff] }
  0x7c   : > { %1256 = vmatpush1.bf16.msra.mxu1 %v1255_v37  ;;  %1226 = vmatprep.subr.bf16.mxu0 %v1225_v49  ;;  %v1231_v4 = vpack.c.bf16 %v466_v2, %v462_v63  ;;  %v1263_v7 = vpack.c.bf16 %v468_v6, %v464_v5  ;;  %v473_v10 = vld [vmem:[#allocation7 + $0x158] sm:$0xff]  ;;  %v1233_v11 = vpack.c.bf16 %v475_v9, %v471_v8  ;;  %v470_v13 = vld [vmem:[#allocation7 + $0x140] sm:$0xff]  ;;  %v472_v17 = vld [vmem:[#allocation7 + $0x150] sm:$0xff] }
  0x7d   : > { %1258 = vmatprep.subr.bf16.mxu1 %v1257_v53  ;;  %v477_v12 = vld [vmem:[#allocation7 + $0x178] sm:$0xff]  ;;  %v474_v14 = vld [vmem:[#allocation7 + $0x160] sm:$0xff]  ;;  %v476_v18 = vld [vmem:[#allocation7 + $0x170] sm:$0xff] }
  0x7e   : > { %v1265_v15 = vpack.c.bf16 %v477_v12, %v473_v10  ;;  %v1235_v16 = vpack.c.bf16 %v474_v14, %v470_v13  ;;  %v479_v19 = vld [vmem:[#allocation7 + $0x188] sm:$0xff]  ;;  %v1267_v20 = vpack.c.bf16 %v476_v18, %v472_v17  ;;  %v481_v22 = vld [vmem:[#allocation7 + $0x198] sm:$0xff]  ;;  %v478_v27 = vld [vmem:[#allocation7 + $0x180] sm:$0xff] }
  0x7f   : > { %1228 = vmatpush1.bf16.msra.mxu0 %v1227_v54  ;;  %v483_v21 = vld [vmem:[#allocation7 + $0x1a8] sm:$0xff]  ;;  %v485_v23 = vld [vmem:[#allocation7 + $0x1b8] sm:$0xff]  ;;  %v482_v28 = vld [vmem:[#allocation7 + $0x1a0] sm:$0xff] }
  0x80   : > { %1260 = vmatpush1.bf16.msra.mxu1 %v1259_v57  ;;  %1230 = vmatprep.subr.bf16.mxu0 %v1229_v61  ;;  %v1237_v25 = vpack.c.bf16 %v483_v21, %v479_v19  ;;  %v1269_v26 = vpack.c.bf16 %v485_v23, %v481_v22  ;;  %v480_v29 = vld [vmem:[#allocation7 + $0x190] sm:$0xff]  ;;  %v1239_v30 = vpack.c.bf16 %v482_v28, %v478_v27  ;;  %v487_v32 = vld [vmem:[#allocation7 + $0x1c8] sm:$0xff]  ;;  %v489_v36 = vld [vmem:[#allocation7 + $0x1d8] sm:$0xff] }
  0x81   : > { %1262 = vmatprep.subr.bf16.mxu1 %v1261_v3  ;;  %v484_v31 = vld [vmem:[#allocation7 + $0x1b0] sm:$0xff]  ;;  %v491_v33 = vld [vmem:[#allocation7 + $0x1e8] sm:$0xff]  ;;  %v493_v37 = vld [vmem:[#allocation7 + $0x1f8] sm:$0xff] }
  0x82   : > { %v1271_v34 = vpack.c.bf16 %v484_v31, %v480_v29  ;;  %v1241_v35 = vpack.c.bf16 %v491_v33, %v487_v32  ;;  %v760_v47 = vld [vmem:[#allocation9 + $0x80] sm:$0xff]  ;;  %v761_v48 = vld [vmem:[#allocation9 + $0x88] sm:$0xff]  ;;  %v762_v12 = vld [vmem:[#allocation9 + $0x90] sm:$0xff] }
  0x83   : > { %1232 = vmatpush1.bf16.msra.mxu0 %v1231_v4  ;;  %v792_v49 = vld [vmem:[#allocation9 + $0x180] sm:$0xff]  ;;  %v1277_v50 = vpack.c.bf16 %v761_v48, %v760_v47  ;;  %v793_v51 = vld [vmem:[#allocation9 + $0x188] sm:$0xff]  ;;  %v763_v13 = vld [vmem:[#allocation9 + $0x98] sm:$0xff] }
  0x84   : > { %1264 = vmatpush1.bf16.msra.mxu1 %v1263_v7  ;;  %1234 = vmatprep.subr.bf16.mxu0 %v1233_v11  ;;  %v1309_v52 = vpack.c.bf16 %v793_v51, %v792_v49  ;;  %v1127_v60 = vld [vmem:[%s2013_s1] ss:$0 sm:$0xff]  ;;  %v745_v2 = vld [vmem:[#allocation9 + $0x8] sm:$0xff]  ;;  %v794_v14 = vld [vmem:[#allocation9 + $0x190] sm:$0xff] }
  0x85   : > { %1266 = vmatprep.subr.bf16.mxu1 %v1265_v15  ;;  %v1128_v62 = vld [vmem:[%s2014_s2] ss:$0 sm:$0xff]  ;;  %v777_v4 = vld [vmem:[#allocation9 + $0x108] sm:$0xff]  ;;  %v1281_v15 = vpack.c.bf16 %v763_v13, %v762_v12  ;;  %v747_v17 = vld [vmem:[#allocation9 + $0x18] sm:$0xff] }
  0x86   : > { %v744_v63 = vld [vmem:[#allocation9] sm:$0xff]  ;;  %v779_v21 = vld [vmem:[#allocation9 + $0x118] sm:$0xff]  ;;  %v797_v27 = vld [vmem:[#allocation9 + $0x1a8] sm:$0xff] }
  0x87   : > { %1236 = vmatpush1.bf16.msra.mxu0 %v1235_v16  ;;  %v776_v3 = vld [vmem:[#allocation9 + $0x100] sm:$0xff]  ;;  %v1279_v9 = vpack.c.bf16 %v745_v2, %v744_v63  ;;  %v795_v16 = vld [vmem:[#allocation9 + $0x198] sm:$0xff]  ;;  %v749_v29 = vld [vmem:[#allocation9 + $0x28] sm:$0xff] }
  0x88   : > { %1268 = vmatpush1.bf16.msra.mxu1 %v1267_v20  ;;  %1238 = vmatprep.subr.bf16.mxu0 %v1237_v25  ;;  %v1311_v10 = vpack.c.bf16 %v777_v4, %v776_v3  ;;  %v1313_v18 = vpack.c.bf16 %v795_v16, %v794_v14  ;;  %v778_v20 = vld [vmem:[#allocation9 + $0x110] sm:$0xff]  ;;  %v764_v23 = vld [vmem:[#allocation9 + $0xa0] sm:$0xff]  ;;  %v781_v33 = vld [vmem:[#allocation9 + $0x128] sm:$0xff] }
  0x89   : > { %1270 = vmatprep.subr.bf16.mxu1 %v1269_v26  ;;  %v1315_v22 = vpack.c.bf16 %v779_v21, %v778_v20  ;;  %v796_v25 = vld [vmem:[#allocation9 + $0x1a0] sm:$0xff]  ;;  %v783_v47 = vld [vmem:[#allocation9 + $0x138] sm:$0xff]  ;;  %v802_v63 = vld [vmem:[#allocation9 + $0x1d0] sm:$0xff] }
  0x8a   : > { %v748_v28 = vld [vmem:[#allocation9 + $0x20] sm:$0xff]  ;;  %v803_v2 = vld [vmem:[#allocation9 + $0x1d8] sm:$0xff]  ;;  %v805_v14 = vld [vmem:[#allocation9 + $0x1e8] sm:$0xff] }
  0x8b   : > { %1240 = vmatpush1.bf16.msra.mxu0 %v1239_v30  ;;  %v1317_v30 = vpack.c.bf16 %v797_v27, %v796_v25  ;;  %v1287_v31 = vpack.c.bf16 %v749_v29, %v748_v28  ;;  %v780_v32 = vld [vmem:[#allocation9 + $0x120] sm:$0xff]  ;;  %v1329_v4 = vpack.c.bf16 %v803_v2, %v802_v63  ;;  %v774_v20 = vld [vmem:[#allocation9 + $0xf0] sm:$0xff]  ;;  %v775_v21 = vld [vmem:[#allocation9 + $0xf8] sm:$0xff] }
  0x8c   : > { %1272 = vmatpush1.bf16.msra.mxu1 %v1271_v34  ;;  %1242 = vmatprep.subr.bf16.mxu0 %v1241_v35  ;;  %v1319_v34 = vpack.c.bf16 %v781_v33, %v780_v32  ;;  %v766_v35 = vld [vmem:[#allocation9 + $0xb0] sm:$0xff]  ;;  %v768_v49 = vld [vmem:[#allocation9 + $0xc0] sm:$0xff]  ;;  %v807_v25 = vld [vmem:[#allocation9 + $0x1f8] sm:$0xff]  ;;  %v496_v33 = vlaneseq }
  0x8d   : > { %v800_v51 = vld [vmem:[#allocation9 + $0x1c0] sm:$0xff]  ;;  %v759_v27 = vld [vmem:[#allocation9 + $0x78] sm:$0xff]  ;;  %v790_v29 = vld [vmem:[#allocation9 + $0x170] sm:$0xff] }
  0x8e   : > { %v804_v13 = vld [vmem:[#allocation9 + $0x1e0] sm:$0xff] }
  0x8f   : > { %v1333_v16 = vpack.c.bf16 %v805_v14, %v804_v13 }
  0xfb   : > { %v384_v38 = vpop.xlane.xlu0 %383 }
  0xfc   : > { %v388_v39 = vmul.f32 0.0078125, %v384_v38  ;;  %v486_v38 = vld [vmem:[#allocation7 + $0x1c0] sm:$0xff] }
  0xfe   : > { %v1891_v40 = vsub.f32 %v1884_v0, %v388_v39  ;;  %v1273_v39 = vpack.c.bf16 %v493_v37, %v489_v36  ;;  %v767_v36 = vld [vmem:[#allocation9 + $0xb8] sm:$0xff]  ;;  %v798_v37 = vld [vmem:[#allocation9 + $0x1b0] sm:$0xff] }
  0xff   : > { %v386_v41 = vpop.xlane.xlu0 %385 }
 0x100   : > { %v389_v42 = vmul.f32 0.0078125, %v386_v41  ;;  %v392_v43 = vmul.f32 %v1891_v40, %v1891_v40  ;;  %v490_v41 = vld [vmem:[#allocation7 + $0x1e0] sm:$0xff]  ;;  %1274 = vmatprep.subr.bf16.mxu1 %v1273_v39  ;;  %v799_v39 = vld [vmem:[#allocation9 + $0x1b8] sm:$0xff] }
 0x102   : > { %v1896_v44 = vsub.f32 %v1887_v1, %v389_v42  ;;  %394 = vadd.xlane.f32.xlu1 %v392_v43  ;;  %v488_v42 = vld [vmem:[#allocation7 + $0x1d0] sm:$0xff] }
 0x103   : > { %v492_v43 = vld [vmem:[#allocation7 + $0x1f0] sm:$0xff] }
 0x104   : > { %v393_v45 = vmul.f32 %v1896_v44, %v1896_v44  ;;  %v1275_v46 = vpack.c.bf16 %v492_v43, %v488_v42  ;;  %v751_v42 = vld [vmem:[#allocation9 + $0x38] sm:$0xff]  ;;  %v1321_v43 = vpack.c.bf16 %v799_v39, %v798_v37  ;;  %v494_v37 = vld [vmem:[%s2016_s4] sm:$0xf] }
 0x106   : > { %396 = vadd.xlane.f32.xlu1 %v393_v45  ;;  %v1243_v45 = vpack.c.bf16 %v490_v41, %v486_v38  ;;  %1276 = vmatpush1.bf16.msra.mxu1 %v1275_v46  ;;  %v1289_v38 = vpack.c.bf16 %v767_v36, %v766_v35  ;;  %v750_v41 = vld [vmem:[#allocation9 + $0x30] sm:$0xff] }
 0x107   : > { %1310 = vmatprep.subr.bf16.mxu1 %v1309_v52  ;;  %v782_v46 = vld [vmem:[#allocation9 + $0x130] sm:$0xff] }
 0x108   : > { %1244 = vmatpush1.bf16.msra.mxu0 %v1243_v45  ;;  %v1291_v45 = vpack.c.bf16 %v751_v42, %v750_v41  ;;  %v1323_v48 = vpack.c.bf16 %v783_v47, %v782_v46 }
 0x109   : > { %1278 = vmatprep.subr.bf16.mxu0 %v1277_v50  ;;  %v769_v50 = vld [vmem:[#allocation9 + $0xc8] sm:$0xff] }
 0x10a   : > { %v1293_v52 = vpack.c.bf16 %v769_v50, %v768_v49 }
 0x18f   : > { %v395_v53 = vpop.xlane.xlu1 %394 }
 0x190   : > { %v398_v54 = vmul.f32 0.0078125, %v395_v53  ;;  %v801_v53 = vld [vmem:[#allocation9 + $0x1c8] sm:$0xff] }
 0x192   : > { %v400_v55 = vadd.f32 1e-07, %v398_v54  ;;  %v752_v54 = vld [vmem:[#allocation9 + $0x40] sm:$0xff] }
 0x193   : > { %v397_v56 = vpop.xlane.xlu1 %396 }
 0x194   : > { %1431 = vrsqrt.f32 %v400_v55  ;;  %v399_v57 = vmul.f32 0.0078125, %v397_v56  ;;  %v753_v55 = vld [vmem:[#allocation9 + $0x48] sm:$0xff]  ;;  %v1325_v56 = vpack.c.bf16 %v801_v53, %v800_v51 }
 0x196   : > { %v401_v58 = vadd.f32 1e-07, %v399_v57  ;;  %v1295_v57 = vpack.c.bf16 %v753_v55, %v752_v54 }
 0x198   : > { %1433 = vrsqrt.f32 %v401_v58  ;;  %v784_v58 = vld [vmem:[#allocation9 + $0x140] sm:$0xff] }
 0x19e   : > { %v1432_v59 = vpop.eup %1431 }
 0x19f   : > { %v404_v61 = vmul.f32 %v1432_v59, %v1891_v40  ;;  %v785_v59 = vld [vmem:[#allocation9 + $0x148] sm:$0xff] }
 0x1a1   : > { %v413_v5 = vmul.f32 %v1127_v60, %v404_v61  ;;  %v1327_v61 = vpack.c.bf16 %v785_v59, %v784_v58 }
 0x1a2   : > { %v1434_v6 = vpop.eup %1433 }
 0x1a3   : > { %v422_v7 = vadd.f32 %v1128_v62, %v413_v5  ;;  %v405_v8 = vmul.f32 %v1434_v6, %v1896_v44  ;;  %v746_v44 = vld [vmem:[#allocation9 + $0x10] sm:$0xff]  ;;  %v755_v6 = vld [vmem:[#allocation9 + $0x58] sm:$0xff] }
 0x1a4   : > { %v1283_v19 = vpack.c.bf16 %v747_v17, %v746_v44  ;;  %v754_v5 = vld [vmem:[#allocation9 + $0x50] sm:$0xff]  ;;  %v757_v44 = vld [vmem:[#allocation9 + $0x68] sm:$0xff]  ;;  %v788_v17 = vld [vmem:[#allocation9 + $0x160] sm:$0xff] }
 0x1a5   : > { %581 = vmatmul.mubr.f32.vlgmr.msra.gmra.mrb[0].mxu0 %v422_v7  ;;  %658 = vmatmul.mubr.f32.vlgmr.msra.gmra.mrb[0].mxu1 %v422_v7  ;;  %v414_v11 = vmul.f32 %v1127_v60, %v405_v8  ;;  %v770_v60 = vld [vmem:[#allocation9 + $0xd0] sm:$0xff]  ;;  %v1299_v8 = vpack.c.bf16 %v755_v6, %v754_v5 }
 0x1a6   : > { %586 = vmatprep.mubr.f32.mxu0 %v1632_v24  ;;  %663 = vmatprep.mubr.f32.mxu1 %v1632_v24  ;;  %v765_v24 = vld [vmem:[#allocation9 + $0xa8] sm:$0xff]  ;;  %v786_v7 = vld [vmem:[#allocation9 + $0x150] sm:$0xff] }
 0x1a7   : > { %v423_v40 = vadd.f32 %v1128_v62, %v414_v11  ;;  %1280 = vmatpush3.bf16.msra.mxu0 %v1279_v9  ;;  %1312 = vmatpush3.bf16.msra.mxu1 %v1311_v10  ;;  %v1285_v26 = vpack.c.bf16 %v765_v24, %v764_v23  ;;  %v771_v62 = vld [vmem:[#allocation9 + $0xd8] sm:$0xff]  ;;  %v772_v10 = vld [vmem:[#allocation9 + $0xe0] sm:$0xff]  ;;  %v773_v11 = vld [vmem:[#allocation9 + $0xe8] sm:$0xff]  ;;  %v1305_v24 = vpack.c.bf16 %v775_v21, %v774_v20 }
 0x1a8   : > { %1282 = vmatprep.subr.bf16.mxu0 %v1281_v15  ;;  %1314 = vmatprep.subr.bf16.mxu1 %v1313_v18  ;;  %v1297_v3 = vpack.c.bf16 %v771_v62, %v770_v60  ;;  %v787_v9 = vld [vmem:[#allocation9 + $0x158] sm:$0xff]  ;;  %v1301_v12 = vpack.c.bf16 %v773_v11, %v772_v10  ;;  %v756_v15 = vld [vmem:[#allocation9 + $0x60] sm:$0xff]  ;;  %v789_v18 = vld [vmem:[#allocation9 + $0x168] sm:$0xff] }
 0x1a9   : > { %587 = vmatmul.mubr.f32.gmra.mrb[2].mxu0 %v423_v40  ;;  %664 = vmatmul.mubr.f32.gmra.mrb[2].mxu1 %v423_v40  ;;  %v1331_v40 = vpack.c.bf16 %v787_v9, %v786_v7  ;;  %v1335_v23 = vpack.c.bf16 %v789_v18, %v788_v17 }
 0x1ab   : > { %1284 = vmatpush3.bf16.msra.mxu0 %v1283_v19  ;;  %1316 = vmatpush3.bf16.msra.mxu1 %v1315_v22  ;;  %v1303_v19 = vpack.c.bf16 %v757_v44, %v756_v15  ;;  %v806_v22 = vld [vmem:[#allocation9 + $0x1f0] sm:$0xff] }
 0x1ac   : > { %1286 = vmatprep.subr.bf16.mxu0 %v1285_v26  ;;  %1318 = vmatprep.subr.bf16.mxu1 %v1317_v30  ;;  %v758_v26 = vld [vmem:[#allocation9 + $0x70] sm:$0xff]  ;;  %v1337_v28 = vpack.c.bf16 %v807_v25, %v806_v22  ;;  %v791_v30 = vld [vmem:[#allocation9 + $0x178] sm:$0xff] }
 0x1ad   : > { %v1339_v32 = vpack.c.bf16 %v791_v30, %v790_v29 }
 0x1af   : > { %1288 = vmatpush3.bf16.msra.mxu0 %v1287_v31  ;;  %1320 = vmatpush3.bf16.msra.mxu1 %v1319_v34  ;;  %v1307_v31 = vpack.c.bf16 %v759_v27, %v758_v26  ;;  %v497_v34 = vshrl.u32 %v496_v33, 7 }
 0x1b0   : > { %1290 = vmatprep.subr.bf16.mxu0 %v1289_v38  ;;  %1322 = vmatprep.subr.bf16.mxu1 %v1321_v43 }
 0x1b1   : > { %v498_v35 = vsub.s32 0, %v497_v34  ;;  %v506_v36 = vsub.s32 2, %v497_v34  ;;  %v502_v38 = vsub.s32 1, %v497_v34  ;;  %v510_v39 = vsub.s32 3, %v497_v34 }
 0x1b3   : > { %1292 = vmatpush3.bf16.msra.mxu0 %v1291_v45  ;;  %1324 = vmatpush3.bf16.msra.mxu1 %v1323_v48  ;;  %v499_v41 = vrot.slane %v494_v37, %v498_v35  ;;  %v507_v42 = vrot.slane %v494_v37, %v506_v36  ;;  %v503_v43 = vrot.slane %v494_v37, %v502_v38 }
 0x1b4   : > { %1294 = vmatprep.subr.bf16.mxu0 %v1293_v52  ;;  %1326 = vmatprep.subr.bf16.mxu1 %v1325_v56  ;;  %v511_v45 = vrot.slane %v494_v37, %v510_v39 }
 0x1b7   : > { %1296 = vmatpush3.bf16.msra.mxu0 %v1295_v57  ;;  %1328 = vmatpush3.bf16.msra.mxu1 %v1327_v61 }
 0x1b8   : > { %1298 = vmatprep.subr.bf16.mxu0 %v1297_v3  ;;  %1330 = vmatprep.subr.bf16.mxu1 %v1329_v4 }
 0x1bb   : > { %1300 = vmatpush3.bf16.msra.mxu0 %v1299_v8  ;;  %1332 = vmatpush3.bf16.msra.mxu1 %v1331_v40 }
 0x1bc   : > { %1302 = vmatprep.subr.bf16.mxu0 %v1301_v12  ;;  %1334 = vmatprep.subr.bf16.mxu1 %v1333_v16 }
 0x1bf   : > { %1304 = vmatpush3.bf16.msra.mxu0 %v1303_v19  ;;  %1336 = vmatpush3.bf16.msra.mxu1 %v1335_v23 }
 0x1c0   : > { %1306 = vmatprep.subr.bf16.mxu0 %v1305_v24  ;;  %1338 = vmatprep.subr.bf16.mxu1 %v1337_v28 }
 0x1c3   : > { %1308 = vmatpush3.bf16.msra.mxu0 %v1307_v31  ;;  %1340 = vmatpush3.bf16.msra.mxu1 %v1339_v32 }
 0x278   : > { %v582_v46 = vpop.f32.mrb[0].mxu0  ;;  %v659_v47 = vpop.f32.mrb[0].mxu1 }
 0x279   : > { %v1915_v48 = vadd.f32 %v582_v46, %v499_v41  ;;  %v1917_v49 = vadd.f32 %v659_v47, %v507_v42  ;;  %v584_v50 = vpop.f32.mrb[1].mxu0  ;;  %v661_v51 = vpop.f32.mrb[1].mxu1 }
 0x27a   : > { %v585_v52 = vadd.f32 %v584_v50, %v503_v43  ;;  %v1919_v53 = vadd.f32 %v661_v51, %v511_v45 }
 0x27b   : > { %v678_v54 = vmul.f32 0.044715, %v1915_v48  ;;  %v680_v55 = vmul.f32 0.044715, %v1917_v49  ;;  %v670_v47 = vmul.f32 0.5, %v1915_v48 }
 0x27c   : > { %v679_v56 = vmul.f32 0.044715, %v585_v52  ;;  %v681_v57 = vmul.f32 0.044715, %v1919_v53  ;;  %v588_v58 = vpop.f32.mrb[2].mxu0  ;;  %v665_v59 = vpop.f32.mrb[2].mxu1 }
 0x27d   : > { %v686_v60 = vmul.f32 %v678_v54, %v1915_v48  ;;  %v688_v61 = vmul.f32 %v680_v55, %v1917_v49  ;;  %v1926_v62 = vadd.f32 %v588_v58, %v499_v41  ;;  %v1928_v63 = vadd.f32 %v665_v59, %v507_v42  ;;  %v590_v2 = vpop.f32.mrb[3].mxu0  ;;  %v667_v3 = vpop.f32.mrb[3].mxu1 }
 0x27e   : > { %v687_v4 = vmul.f32 %v679_v56, %v585_v52  ;;  %v689_v5 = vmul.f32 %v681_v57, %v1919_v53  ;;  %v591_v6 = vadd.f32 %v590_v2, %v503_v43  ;;  %v668_v7 = vadd.f32 %v667_v3, %v511_v45 }
 0x27f   : > { %v694_v8 = vmul.f32 %v686_v60, %v1915_v48  ;;  %v696_v9 = vmul.f32 %v688_v61, %v1917_v49  ;;  %v682_v10 = vmul.f32 0.044715, %v1926_v62  ;;  %v684_v11 = vmul.f32 0.044715, %v1928_v63 }
 0x280   : > { %v683_v40 = vmul.f32 0.044715, %v591_v6  ;;  %v685_v12 = vmul.f32 0.044715, %v668_v7  ;;  %v695_v13 = vmul.f32 %v687_v4, %v585_v52  ;;  %v697_v22 = vmul.f32 %v689_v5, %v1919_v53 }
 0x281   : > { %v702_v14 = vadd.f32 %v694_v8, %v1915_v48  ;;  %v704_v15 = vadd.f32 %v696_v9, %v1917_v49  ;;  %v690_v16 = vmul.f32 %v682_v10, %v1926_v62  ;;  %v692_v21 = vmul.f32 %v684_v11, %v1928_v63 }
 0x282   : > { %v691_v44 = vmul.f32 %v683_v40, %v591_v6  ;;  %v693_v17 = vmul.f32 %v685_v12, %v668_v7  ;;  %v703_v18 = vadd.f32 %v695_v13, %v585_v52  ;;  %v705_v26 = vadd.f32 %v697_v22, %v1919_v53 }
 0x283   : > { %v710_v19 = vmul.f32 0.7978846, %v702_v14  ;;  %v712_v20 = vmul.f32 0.7978846, %v704_v15  ;;  %v698_v27 = vmul.f32 %v690_v16, %v1926_v62  ;;  %v700_v32 = vmul.f32 %v692_v21, %v1928_v63 }
 0x284   : > { %v711_v23 = vmul.f32 0.7978846, %v703_v18  ;;  %v699_v24 = vmul.f32 %v691_v44, %v591_v6  ;;  %v701_v25 = vmul.f32 %v693_v17, %v668_v7  ;;  %v713_v30 = vmul.f32 0.7978846, %v705_v26  ;;  %v1129_v44 = vld [vmem:[%s2018_s6] ss:$0 sm:$0xff] }
 0x285   : > { %1435 = vtanh.f32 %v710_v19  ;;  %v706_v31 = vadd.f32 %v698_v27, %v1926_v62  ;;  %v708_v36 = vadd.f32 %v700_v32, %v1928_v63  ;;  %v671_v43 = vmul.f32 0.5, %v585_v52 }
 0x286   : > { %1437 = vtanh.f32 %v712_v20  ;;  %v707_v28 = vadd.f32 %v699_v24, %v591_v6  ;;  %v709_v29 = vadd.f32 %v701_v25, %v668_v7  ;;  %v673_v55 = vmul.f32 0.5, %v1919_v53 }
 0x287   : > { %1439 = vtanh.f32 %v711_v23  ;;  %v714_v35 = vmul.f32 0.7978846, %v706_v31  ;;  %v716_v37 = vmul.f32 0.7978846, %v708_v36  ;;  %v672_v58 = vmul.f32 0.5, %v1917_v49 }
 0x288   : > { %v715_v33 = vmul.f32 0.7978846, %v707_v28  ;;  %v717_v34 = vmul.f32 0.7978846, %v709_v29  ;;  %1441 = vtanh.f32 %v713_v30  ;;  %v675_v60 = vmul.f32 0.5, %v591_v6 }
 0x289   : > { %v677_v52 = vmul.f32 0.5, %v668_v7  ;;  %v674_v9 = vmul.f32 0.5, %v1926_v62  ;;  %v676_v6 = vmul.f32 0.5, %v1928_v63 }
 0x28a   : > { %1443 = vtanh.f32 %v715_v33 }
 0x28b   : > { %1445 = vtanh.f32 %v717_v34 }
 0x28c   : > { %1447 = vtanh.f32 %v714_v35 }
 0x28d   : > { %1449 = vtanh.f32 %v716_v37 }
 0x28f   : > { %v1436_v38 = vpop.eup %1435 }
 0x290   : > { %v1438_v39 = vpop.eup %1437  ;;  %v726_v42 = vadd.f32 1.0, %v1436_v38 }
 0x291   : > { %v1440_v41 = vpop.eup %1439  ;;  %v728_v50 = vadd.f32 1.0, %v1438_v39 }
 0x292   : > { %v727_v45 = vadd.f32 1.0, %v1440_v41  ;;  %v1442_v46 = vpop.eup %1441  ;;  %v734_v59 = vmul.f32 %v726_v42, %v670_v47 }
 0x293   : > { %v729_v56 = vadd.f32 1.0, %v1442_v46  ;;  %v736_v48 = vmul.f32 %v728_v50, %v672_v58 }
 0x294   : > { %v1444_v51 = vpop.eup %1443  ;;  %v735_v54 = vmul.f32 %v727_v45, %v671_v43 }
 0x295   : > { %v1446_v57 = vpop.eup %1445  ;;  %v731_v61 = vadd.f32 1.0, %v1444_v51  ;;  %v737_v3 = vmul.f32 %v729_v56, %v673_v55 }
 0x296   : > { %v1448_v2 = vpop.eup %1447  ;;  %872 = vmatprep.mubr.f32.mxu0 %v735_v54  ;;  %v733_v4 = vadd.f32 1.0, %v1446_v57 }
 0x297   : > { %v1450_v5 = vpop.eup %1449  ;;  %873 = vmatmul.mubr.f32.vlgmr.msra.gmra.mrb[4].mxu0 %v734_v59  ;;  %v739_v8 = vmul.f32 %v731_v61, %v675_v60  ;;  %v730_v10 = vadd.f32 1.0, %v1448_v2  ;;  %947 = vmatprep.mubr.f32.mxu1 %v737_v3 }
 0x298   : > { %v741_v53 = vmul.f32 %v733_v4, %v677_v52  ;;  %v732_v11 = vadd.f32 1.0, %v1450_v5  ;;  %948 = vmatmul.mubr.f32.vlgmr.msra.gmra.mrb[4].mxu1 %v736_v48 }
 0x299   : > { %877 = vmatprep.mubr.f32.mxu0 %v739_v8  ;;  %v738_v49 = vmul.f32 %v730_v10, %v674_v9 }
 0x29a   : > { %952 = vmatprep.mubr.f32.mxu1 %v741_v53  ;;  %v740_v40 = vmul.f32 %v732_v11, %v676_v6 }
 0x29b   : > { %878 = vmatmul.mubr.f32.gmra.mrb[6].mxu0 %v738_v49 }
 0x29c   : > { %953 = vmatmul.mubr.f32.gmra.mrb[6].mxu1 %v740_v40 }
 0x36a   : > { %v1169_v7 = vpop.f32.mrb[4].mxu0 }
 0x36b   : > { %v1170_v12 = vpop.f32.mrb[5].mxu0  ;;  %v1207_v13 = vpop.f32.mrb[4].mxu1 }
 0x36c   : > { %v1171_v14 = vadd.f32 %v1170_v12, %v1169_v7  ;;  %v1208_v62 = vpop.f32.mrb[5].mxu1 }
 0x36d   : > { %v1209_v15 = vadd.f32 %v1208_v62, %v1207_v13 }
 0x36e   : > { %v1172_v16 = vpop.f32.mrb[6].mxu0 }
 0x36f   : > { %v1173_v17 = vpop.f32.mrb[7].mxu0  ;;  %v950_v18 = vadd.f32 %v1209_v15, %v1171_v14  ;;  %v1210_v63 = vpop.f32.mrb[6].mxu1 }
 0x370   : > { %v1174_v19 = vadd.f32 %v1173_v17, %v1172_v16  ;;  %v1211_v20 = vpop.f32.mrb[7].mxu1 }
 0x371   : > { %v974_v21 = vadd.f32 %v1129_v44, %v950_v18  ;;  %v1212_v22 = vadd.f32 %v1211_v20, %v1210_v63 }
 0x373   : > { %v978_v23 = vadd.f32 %v974_v21, %v1884_v0  ;;  %v955_v24 = vadd.f32 %v1212_v22, %v1174_v19 }
 0x375   : > { %980 = vst [vmem:[%s367_s30] sm:$0xff] %v978_v23  ;;  %v975_v25 = vadd.f32 %v1129_v44, %v955_v24 }
 0x377   : > { %v979_v26 = vadd.f32 %v975_v25, %v1887_v1 }
 0x379   : > { %981 = vst [vmem:[%s367_s30 + $0x8] sm:$0xff] %v979_v26 }
 0x37a   : > { %1550 = shalt.err (!%p1547_p11)
}
 0x37b   : > { %s1551_s17 = scalar_lea.hbm %s1960_s9, 256  ;;  %s1555_s18 = scalar_lea.hbm %s2019_s7, 512 }
 0x37c   : > { %p1552_p0 = scmp.ne.s32.totalorder %s1960_s9, %s1551_s17  ;;  %p1556_p6 = scmp.lt.u32.totalorder %s1960_s9, %s2019_s7 }
 0x37d   : > { %p1557_p7 = scmp.lt.u32.totalorder %s1555_s18, %s1551_s17  ;;  %p1559_p8 = scmp.lt.u32.totalorder %s1551_s17, %s1960_s9 }
 0x37e   : > { %p1553_p4 = pnand %p1552_p0, %p2040_p12 }
 0x37f   : > { %p1558_p2 = por %p1557_p7, %p1556_p6 }
 0x380   : > { %p1554_p13 = pneg %p1553_p4 }
 0x381   : > { %p1560_p1 = por %p1559_p8, %p1558_p2 }
 0x383   : > { %p1561_p10 = pnand %p1560_p1, %p1554_p13 }
 0x385   : > { %1564 = shalt.err (!%p1561_p10)
}
 0x386   : > { %s1634_s23 = smov 128   ;;  %s1635_s24 = smov 8  }
 0x387   : > { %1351 = dma.vmem_to_hbm [thread:$0]  (%p2040_p12), %s1962_s15, 256, %s1960_s9, %s983_s11, %s1634_s23, %s1634_s23, %s1635_s24  }
 0x388 PF: > { %s2041_s10 = sld [smem:[#allocation14_spill]]  ;;  %s2042_s27 = sld [smem:[#allocation15_spill]] }
 0x389   : > { %p2044_p5 = scmp.ge.s32.totalorder %s1623_s29, 2 }
 0x38e   : > { %s1011_s13 = sand.u32 1, %s2041_s10   ;;  %p2043_p3 = scmp.ne.s32.totalorder %s2042_s27, 0 }
 0x38f   : > { %s1012_s12 = scalar_lea.sflag [#allocation6], %s1011_s13 }
 0x390   : > { %p1365_p9 = pnand %p2044_p5, %p2043_p3 }
 0x392   : > { %1598 = dma.done.wait (!%p1365_p9), %s1012_s12, 256  }
 0x393   : > { %1600 = vsyncadd (!%p1365_p9), %s1012_s12, 4294967040  ;;  %s24_s29 = sadd.s32 1, %s1623_s29   ;;  %s2045_s24 = smov %s1607_s25 }
 0x394   : > { %p21_p11 = scmp.ge.s32.totalorder %s24_s29, 4   ;;  %s2046_s25 = smov %s1611_s26 }
 0x395   : > { %s2047_s26 = smov %s1821_s8  ;;  %s2048_s27 = smov %s1619_s28 }
 0x396   : > { %s2049_s28 = smov %s2051_s20  ;;  %23 = sbr.rel (!%p21_p11) target bundleno = 7 (0x7), region = 114 }
 0x39d   :  { %1017 = vsyncpa [#allocation5], 1 }
 0x39e   :  { %1019 = vsyncpa [#allocation5 + $0x1], 1 }
 0x39f   :  { %1020 = vsyncpa [#allocation8], 1 }
 0x3a0   :  { %1021 = vsyncpa [#allocation6], 1 }
 0x3a1   :  { %1023 = vsyncpa [#allocation6 + $0x1], 1 }

</bundles_post_ra>
